<compile_context>
chip_gen: v5e
topology: v5e:2x2
jax: 0.10.0
libtpu: 0.0.40
codegen_flags: <defaults>
</compile_context>

<pallas_src>
import jax
import jax.numpy as jnp
from jax.experimental import pallas as pl
from jax.experimental.pallas import tpu as pltpu


def _round_up(x: int, n: int) -> int:
    return pl.cdiv(x, n) * n


def _plan(m: int, inputs: int, hidden: int, x_bytes: int, w_bytes: int):
    """Pick (tm, th, hidden_padded, grid_h, vmem_limit) from the chip's VMEM."""
    try:
        info = pltpu.get_tpu_info()
        vmem_cap = int(getattr(info, "vmem_capacity_bytes", 64 << 20))
    except Exception:  # no chip / query unavailable -> conservative default
        vmem_cap = 64 << 20
    budget = int(vmem_cap * 0.80)   # ~102 MiB on v5e/v6e, ~51 MiB on v7x

    def wbytes(th):  # w1 + w2 + b1 + b2 for one hidden tile
        return (2 * inputs * th + th + inputs) * w_bytes

    if wbytes(hidden) <= budget // 2:
        # Weights fully resident: one hidden tile, single-buffered.
        th, hidden_p, grid_h, w_mult = hidden, hidden, 1, 1
    else:
        # Stream the hidden axis: tiles are a multiple of 128 and double-buffered.
        th = _round_up(hidden, 128)
        while th > 128 and 2 * wbytes(th) > budget // 2:
            th = max(128, _round_up(th // 2, 128))
        hidden_p = _round_up(hidden, th)
        grid_h = hidden_p // th
        w_mult = 2

    tm = 1024
    while tm > 8:
        need = (4 * tm * inputs * x_bytes      # x + out tiles, double-buffered
                + w_mult * wbytes(th)          # weights / biases
                + tm * inputs * 4              # f32 accumulator scratch
                + 2 * tm * th * 4)             # f32 hidden intermediates headroom
        if need <= budget:
            break
        tm //= 2
    tm = max(8, min(tm, _round_up(m, 8)))

    # v7x megacore: prefer >= 2 row tiles so both TensorCores get work.
    if m > 8 and pl.cdiv(m, tm) < 2:
        tm = max(8, _round_up(pl.cdiv(m, 2), 8))

    vmem_limit = int(min(vmem_cap, budget + (8 << 20)))
    return tm, th, hidden_p, grid_h, vmem_limit


def _ffn_kernel(x_ref, w1_ref, b1_ref, w2_ref, b2_ref, o_ref, acc_ref):
    # x_ref:  (tm, inputs)    w1_ref: (inputs, th)   b1_ref: (1, th)
    # w2_ref: (th, inputs)    b2_ref: (1, inputs)    o_ref:  (tm, inputs)
    # acc_ref:(tm, inputs) f32 accumulator across the hidden ("arbitrary") axis.
    j = pl.program_id(1)

    @pl.when(j == 0)
    def _init():
        acc_ref[...] = jnp.zeros_like(acc_ref)

    # upscale: Linear(inputs -> hidden tile). MXU fed in the weights' dtype,
    # f32 accumulation via preferred_element_type.
    lhs = x_ref[...].astype(w1_ref.dtype)
    h = jnp.dot(lhs, w1_ref[...], preferred_element_type=jnp.float32)
    h = h + b1_ref[...].astype(jnp.float32)

    # Mish: h * tanh(softplus(h)), with tanh(softplus(h)) = n / (n + 2),
    # n = e^h * (e^h + 2). One EUP exp + one approx reciprocal; exp clamped at
    # 20 where the ratio is already exactly 1.0 in f32 (so mish(h) -> h).
    e = jnp.exp(jnp.minimum(h, 20.0))
    n = e * (e + 2.0)
    t = n * pl.reciprocal(n + 2.0, approx=True)
    g = (h * t).astype(w2_ref.dtype)

    # downscale: Linear(hidden tile -> inputs), accumulated across hidden tiles.
    acc_ref[...] += jnp.dot(g, w2_ref[...], preferred_element_type=jnp.float32)

    @pl.when(j == pl.num_programs(1) - 1)
    def _finalize():
        y = acc_ref[...] + b2_ref[...].astype(jnp.float32)
        o_ref[...] = y.astype(o_ref.dtype)   # dropout == identity (eval / p=None)


def feed_forward_net(x, w1, b1, w2, b2, *, use_bf16_mxu: bool = False):
    """x: (..., inputs). w1: (inputs, hidden), b1: (hidden,),
    w2: (hidden, inputs), b2: (inputs,). Returns same shape/dtype as x."""
    orig_shape = x.shape
    orig_dtype = x.dtype
    inputs = orig_shape[-1]
    hidden = w1.shape[-1]
    x2d = x.reshape(-1, inputs)
    m = x2d.shape[0]

    if use_bf16_mxu and w1.dtype == jnp.float32:
        # Optional: feed the MXU at its native bf16 rate (v6e/v7x) and halve
        # weight VMEM residency; f32 accumulation preserved. Off by default.
        w1 = w1.astype(jnp.bfloat16)
        w2 = w2.astype(jnp.bfloat16)

    x_bytes = jnp.dtype(x2d.dtype).itemsize
    w_bytes = jnp.dtype(w1.dtype).itemsize

    tm, th, hidden_p, grid_h, vmem_limit = _plan(m, inputs, hidden, x_bytes, w_bytes)
    grid_m = pl.cdiv(m, tm)

    # Pad the hidden axis only if it has to be tiled. Zero weight columns/rows
    # plus zero bias entries give h == 0 -> mish(0) == 0 -> contribute 0: exact.
    if hidden_p != hidden:
        w1 = jnp.zeros((inputs, hidden_p), w1.dtype).at[:, :hidden].set(w1)
        b1 = jnp.zeros((hidden_p,), b1.dtype).at[:hidden].set(b1)
        w2 = jnp.zeros((hidden_p, inputs), w2.dtype).at[:hidden, :].set(w2)
    b1_2d = b1.reshape(1, hidden_p)
    b2_2d = b2.reshape(1, inputs)

    # Resident weights (grid_h == 1, constant index_map) only need one buffer.
    w_mode = pl.Buffered(1) if grid_h == 1 else pl.Buffered(2)

    cost = pl.CostEstimate(
        flops=int(4 * m * inputs * hidden_p),
        transcendentals=int(m * hidden_p),
        bytes_accessed=int(x2d.size * x_bytes + (w1.size + w2.size) * w_bytes
                           + m * inputs * x_bytes),
    )

    out = pl.pallas_call(
        _ffn_kernel,
        out_shape=jax.ShapeDtypeStruct((m, inputs), orig_dtype),
        grid_spec=pltpu.PrefetchScalarGridSpec(
            num_scalar_prefetch=0,
            grid=(grid_m, grid_h),
            in_specs=[
                pl.BlockSpec((tm, inputs), lambda i, j: (i, 0)),          # x tile
                pl.BlockSpec((inputs, th), lambda i, j: (0, j),
                             pipeline_mode=w_mode),                       # w1
                pl.BlockSpec((1, th), lambda i, j: (0, j),
                             pipeline_mode=w_mode),                       # b1
                pl.BlockSpec((th, inputs), lambda i, j: (j, 0),
                             pipeline_mode=w_mode),                       # w2
                pl.BlockSpec((1, inputs), lambda i, j: (0, 0),
                             pipeline_mode=pl.Buffered(1)),               # b2
            ],
            out_specs=pl.BlockSpec((tm, inputs), lambda i, j: (i, 0)),
            scratch_shapes=[pltpu.VMEM((tm, inputs), jnp.float32)],
        ),
        compiler_params=pltpu.CompilerParams(
            dimension_semantics=("parallel", "arbitrary"),
            vmem_limit_bytes=vmem_limit,
        ),
        cost_estimate=cost,
    )(x2d, w1, b1_2d, w2, b2_2d)

    return out.reshape(orig_shape)


if __name__ == "__main__":
    # Small shapes implied by the module: x of shape (batch, seq, inputs).
    batch, seq, inputs, hidden = 2, 8, 16, 32

    key = jax.random.PRNGKey(0)
    kx, kw1, kb1, kw2, kb2 = jax.random.split(key, 5)

    x = jax.random.normal(kx, (batch, seq, inputs), dtype=jnp.float32)

    # Deterministic parameter init (uniform like PyTorch Linear's default range).
    bound1 = 1.0 / (inputs ** 0.5)
    w1 = jax.random.uniform(kw1, (inputs, hidden), jnp.float32, -bound1, bound1)
    b1 = jax.random.uniform(kb1, (hidden,), jnp.float32, -bound1, bound1)
    bound2 = 1.0 / (hidden ** 0.5)
    w2 = jax.random.uniform(kw2, (hidden, inputs), jnp.float32, -bound2, bound2)
    b2 = jax.random.uniform(kb2, (inputs,), jnp.float32, -bound2, bound2)

    y = feed_forward_net(x, w1, b1, w2, b2)
    jax.block_until_ready(y)

    # Reference check in plain JAX (exact Mish). Tolerance is loosened slightly
    # because the kernel uses the EUP approx reciprocal in the Mish ratio.
    h_ref = x @ w1 + b1
    h_ref = h_ref * jnp.tanh(jax.nn.softplus(h_ref))
    y_ref = h_ref @ w2 + b2
    assert y.shape == x.shape and y.dtype == x.dtype
    assert jnp.allclose(y, y_ref, atol=2e-3, rtol=2e-3)

    print("KERNEL_OK")
</pallas_src>

<mosaic_0001>
module attributes {stable_mosaic.version = 11 : i64} {
  func.func @_ffn_kernel(%arg0: i32, %arg1: i32, %arg2: memref<8x16xf32, #tpu.memory_space<vmem>>, %arg3: memref<16x32xf32, #tpu.memory_space<vmem>>, %arg4: memref<1x32xf32, #tpu.memory_space<vmem>>, %arg5: memref<32x16xf32, #tpu.memory_space<vmem>>, %arg6: memref<1x16xf32, #tpu.memory_space<vmem>>, %arg7: memref<8x16xf32, #tpu.memory_space<vmem>>, %arg8: memref<8x16xf32, #tpu.memory_space<vmem>>) attributes {dimension_semantics = [#tpu.dimension_semantics<parallel>, #tpu.dimension_semantics<arbitrary>], iteration_bounds = array<i64: 2, 1>, scalar_prefetch = 0 : i64, scratch_operands = 1 : i64, tpu.core_type = #tpu.core_type<tc>, window_params = [{transform_indices = @transform_0, window_bounds = array<i64: 8, 16>}, {pipeline_mode = #tpu.pipeline_mode<synchronous>, transform_indices = @transform_1, window_bounds = array<i64: 16, 32>}, {pipeline_mode = #tpu.pipeline_mode<synchronous>, transform_indices = @transform_2, window_bounds = array<i64: 1, 32>}, {pipeline_mode = #tpu.pipeline_mode<synchronous>, transform_indices = @transform_3, window_bounds = array<i64: 32, 16>}, {pipeline_mode = #tpu.pipeline_mode<synchronous>, transform_indices = @transform_4, window_bounds = array<i64: 1, 16>}, {transform_indices = @transform_5, window_bounds = array<i64: 8, 16>}]} {
    %c0_i32 = arith.constant 0 : i32
    %0 = arith.cmpi eq, %arg1, %c0_i32 : i32
    %1 = arith.extui %0 : i1 to i32
    %c0_i32_0 = arith.constant 0 : i32
    %2 = arith.cmpi ne, %1, %c0_i32_0 : i32
    scf.if %2 {
      %cst_18 = arith.constant 0.000000e+00 : f32
      %28 = vector.broadcast %cst_18 : f32 to vector<8x16xf32>
      %c0_19 = arith.constant 0 : index
      %c0_20 = arith.constant 0 : index
      %29 = vector.load %arg8[%c0_19, %c0_20] : memref<8x16xf32, #tpu.memory_space<vmem>>, vector<8x16xf32>
      tpu.vector_store %arg8[%c0_19, %c0_20], %28 {strides = array<i32>} : memref<8x16xf32, #tpu.memory_space<vmem>>, vector<8x16xf32>,
    } else {
    }
    %c0 = arith.constant 0 : index
    %c0_1 = arith.constant 0 : index
    %3 = vector.load %arg2[%c0, %c0_1] : memref<8x16xf32, #tpu.memory_space<vmem>>, vector<8x16xf32>
    %c0_2 = arith.constant 0 : index
    %c0_3 = arith.constant 0 : index
    %4 = vector.load %arg3[%c0_2, %c0_3] : memref<16x32xf32, #tpu.memory_space<vmem>>, vector<16x32xf32>
    %cst = arith.constant dense<0.000000e+00> : vector<8x32xf32>
    %5 = tpu.matmul %3, %4, %cst {dimension_numbers = #tpu.dot_dimension_numbers<[1], [0], [0], [1], [0, 0, 1, 1], [], []>} : vector<8x16xf32>, vector<16x32xf32>, vector<8x32xf32> -> vector<8x32xf32>
    %c0_4 = arith.constant 0 : index
    %c0_5 = arith.constant 0 : index
    %6 = vector.load %arg4[%c0_4, %c0_5] : memref<1x32xf32, #tpu.memory_space<vmem>>, vector<1x32xf32>
    %7 = vector.broadcast %6 : vector<1x32xf32> to vector<8x32xf32>
    %8 = arith.addf %5, %7 : vector<8x32xf32>
    %cst_6 = arith.constant 2.000000e+01 : f32
    %9 = vector.broadcast %cst_6 : f32 to vector<8x32xf32>
    %10 = arith.minimumf %8, %9 : vector<8x32xf32>
    %11 = math.exp %10 : vector<8x32xf32>
    %cst_7 = arith.constant 2.000000e+00 : f32
    %12 = vector.broadcast %cst_7 : f32 to vector<8x32xf32>
    %13 = arith.addf %11, %12 : vector<8x32xf32>
    %14 = arith.mulf %11, %13 : vector<8x32xf32>
    %cst_8 = arith.constant 2.000000e+00 : f32
    %15 = vector.broadcast %cst_8 : f32 to vector<8x32xf32>
    %16 = arith.addf %14, %15 : vector<8x32xf32>
    %17 = tpu.reciprocal %16 {approx = true} : vector<8x32xf32> -> vector<8x32xf32>
    %18 = arith.mulf %14, %17 : vector<8x32xf32>
    %19 = arith.mulf %8, %18 : vector<8x32xf32>
    %c0_9 = arith.constant 0 : index
    %c0_10 = arith.constant 0 : index
    %20 = vector.load %arg8[%c0_9, %c0_10] : memref<8x16xf32, #tpu.memory_space<vmem>>, vector<8x16xf32>
    %c0_11 = arith.constant 0 : index
    %c0_12 = arith.constant 0 : index
    %21 = vector.load %arg5[%c0_11, %c0_12] : memref<32x16xf32, #tpu.memory_space<vmem>>, vector<32x16xf32>
    %cst_13 = arith.constant dense<0.000000e+00> : vector<8x16xf32>
    %22 = tpu.matmul %19, %21, %cst_13 {dimension_numbers = #tpu.dot_dimension_numbers<[1], [0], [0], [1], [0, 0, 1, 1], [], []>} : vector<8x32xf32>, vector<32x16xf32>, vector<8x16xf32> -> vector<8x16xf32>
    %23 = arith.addf %20, %22 : vector<8x16xf32>
    %c0_14 = arith.constant 0 : index
    %c0_15 = arith.constant 0 : index
    %24 = vector.load %arg8[%c0_14, %c0_15] : memref<8x16xf32, #tpu.memory_space<vmem>>, vector<8x16xf32>
    tpu.vector_store %arg8[%c0_14, %c0_15], %23 {strides = array<i32>} : memref<8x16xf32, #tpu.memory_space<vmem>>, vector<8x16xf32>,
    %c0_i32_16 = arith.constant 0 : i32
    %25 = arith.cmpi eq, %arg1, %c0_i32_16 : i32
    %26 = arith.extui %25 : i1 to i32
    %c0_i32_17 = arith.constant 0 : i32
    %27 = arith.cmpi ne, %26, %c0_i32_17 : i32
    scf.if %27 {
      %c0_18 = arith.constant 0 : index
      %c0_19 = arith.constant 0 : index
      %28 = vector.load %arg8[%c0_18, %c0_19] : memref<8x16xf32, #tpu.memory_space<vmem>>, vector<8x16xf32>
      %c0_20 = arith.constant 0 : index
      %c0_21 = arith.constant 0 : index
      %29 = vector.load %arg6[%c0_20, %c0_21] : memref<1x16xf32, #tpu.memory_space<vmem>>, vector<1x16xf32>
      %30 = vector.broadcast %29 : vector<1x16xf32> to vector<8x16xf32>
      %31 = arith.addf %28, %30 : vector<8x16xf32>
      %c0_22 = arith.constant 0 : index
      %c0_23 = arith.constant 0 : index
      %32 = vector.load %arg7[%c0_22, %c0_23] : memref<8x16xf32, #tpu.memory_space<vmem>>, vector<8x16xf32>
      tpu.vector_store %arg7[%c0_22, %c0_23], %31 {strides = array<i32>} : memref<8x16xf32, #tpu.memory_space<vmem>>, vector<8x16xf32>,
    } else {
    }
    return
  }
  func.func @transform_0(%arg0: i32, %arg1: i32) -> (i32, i32) {
    %c0_i32 = arith.constant 0 : i32
    %c0_i32_0 = arith.constant 0 : i32
    return %arg0, %c0_i32 : i32, i32
  }
  func.func @transform_1(%arg0: i32, %arg1: i32) -> (i32, i32) {
    %c0_i32 = arith.constant 0 : i32
    %c0_i32_0 = arith.constant 0 : i32
    return %c0_i32, %arg1 : i32, i32
  }
  func.func @transform_2(%arg0: i32, %arg1: i32) -> (i32, i32) {
    %c0_i32 = arith.constant 0 : i32
    %c0_i32_0 = arith.constant 0 : i32
    return %c0_i32, %arg1 : i32, i32
  }
  func.func @transform_3(%arg0: i32, %arg1: i32) -> (i32, i32) {
    %c0_i32 = arith.constant 0 : i32
    %c0_i32_0 = arith.constant 0 : i32
    return %arg1, %c0_i32 : i32, i32
  }
  func.func @transform_4(%arg0: i32, %arg1: i32) -> (i32, i32) {
    %c0_i32 = arith.constant 0 : i32
    %c0_i32_0 = arith.constant 0 : i32
    %c0_i32_1 = arith.constant 0 : i32
    return %c0_i32, %c0_i32_0 : i32, i32
  }
  func.func @transform_5(%arg0: i32, %arg1: i32) -> (i32, i32) {
    %c0_i32 = arith.constant 0 : i32
    %c0_i32_0 = arith.constant 0 : i32
    return %arg0, %c0_i32 : i32, i32
  }
}

</mosaic_0001>

<bundles_post_ra>
// kernel: tpu_custom_call.1
= control target key start
LH: loop header
LB: loop body
LE: loop exit
PB: predicated region body
PF: predicated region fallthrough
CT: control target
= control target key end

     0   :  { %10 = vsyncpa [#allocation4], 0  ;;  %s811_s0 = inlined_call_operand.vmem [shape: f32[16,16], index: 0, kind: input, shape index: {}]   ;;  %s812_s1 = inlined_call_operand.vmem [shape: f32[16,32], index: 1, kind: input, shape index: {}]   ;;  %s813_s2 = inlined_call_operand.vmem [shape: f32[1,32], index: 2, kind: input, shape index: {}]   ;;  %s814_s3 = inlined_call_operand.vmem [shape: f32[32,16], index: 3, kind: input, shape index: {}]   ;;  %s815_s4 = inlined_call_operand.vmem [shape: f32[1,16], index: 4, kind: input, shape index: {}]   ;;  %s816_s5 = inlined_call_operand.hbm [shape: f32[16,16], index: 5, kind: output, shape index: {}]  }
   0x1   :  { %12 = vsyncpa [#allocation4 + $0x1], 0  ;;  %s686_s18 = smov 0   ;;  %s688_s19 = smov 0  }
   0x2   :  { %s690_s20 = smov 0   ;;  %s692_s21 = smov 0  }
   0x3   :  { %s694_s22 = smov 0   ;;  %s696_s23 = smov 0  }
   0x4 LB: > { %s497_s24 = sadd.s32 4294967295, %s653_s23   ;;  %s498_s25 = sadd.s32 4294967294, %s653_s23   ;;  %s653_s23 = sphi %s696_s23, %s18_s23   ;;  %s649_s22 = sphi %s694_s22, %s823_s22   ;;  %s645_s21 = sphi %s692_s21, %s822_s21   ;;  %s641_s20 = sphi %s690_s20, %s821_s20   ;;  %s637_s19 = sphi %s688_s19, %s820_s19   ;;  %s633_s18 = sphi %s686_s18, %s819_s18  }
   0x5   : > { %s30_s26 = sadd.s32 1, %s649_s22  ;;  %s162_s27 = sadd.s32 1, %s641_s20 }
   0x6   : > { %p32_p0 = scmp.ge.s32.totalorder %s30_s26, 2  ;;  %p172_p1 = scmp.ne.s32.totalorder %s641_s20, %s637_s19 }
   0x7   : > { %p173_p2 = scmp.eq.s32.totalorder %s497_s24, 1  ;;  %p178_p3 = scmp.ne.s32.totalorder %s637_s19, %s633_s18 }
   0x8   : > { %s825_s26 = smov (%p32_p0, %s30_s26), 0  ;;  %p179_p5 = scmp.eq.s32.totalorder %s498_s25, 1 }
   0x9   : > { %p726_p4 = por %p173_p2, %p172_p1  ;;  %s159_s29 = ssub.s32 %s649_s22, %s825_s26 }
   0xa   : > { %p504_p6 = scmp.ge.s32.totalorder %s653_s23, 1  ;;  %p160_p7 = scmp.eq.s32.totalorder %s159_s29, 0 }
   0xb   : > { %p733_p8 = por %p179_p5, %p178_p3  ;;  %p229_p9 = scmp.lt.s32.totalorder %s653_s23, 3 }
   0xc   : > { %s739_s6 = scalar_select %p160_p7, %s641_s20, %s162_s27  }
   0xd   : > { %p230_p10 = pnand %p504_p6, %p229_p9 }
   0xe   : > { %p268_p11 = scmp.lt.s32.totalorder (!%p230_p10), %s645_s21, 1  ;;  %s510_s13 = sshll.u32 (!%p230_p10), %s645_s21, 3 }
   0xf   : > { %233 = sbr.rel (%p230_p10) target bundleno = 322 (0x142), region = 40  ;;  %s383_s16 = scalar_lea.hbm (!%p230_p10), %s816_s5, %s510_s13 }
  0x10   : > { %s387_s29 = sshll.u32 (!%p230_p10), %s383_s16, 4  ;;  %s388_s29 = int_to_ptr.hbm [resolvable:$true] %s387_s29 }
  0x11   : > { %s589_s7 = sshra.s32 (!%p230_p10), %s388_s29, 4  ;;  %s590_s7 = int_to_ptr.hbm [resolvable:$true] %s589_s7 }
  0x12   : > { %s591_s8 = scalar_lea.hbm (!%p230_p10), %s590_s7, 8  ;;  %p596_p1 = scmp.lt.s32.totalorder (!%p230_p10), %s590_s7, %s816_s5 }
  0x13   : > { %p592_p12 = scmp.ne.s32.totalorder (!%p230_p10), %s590_s7, %s591_s8 }
  0x14   : > { %v293_v0 = vld [vmem:[%s812_s1 + $0x8] sm:$0xff]  ;;  %v292_v1 = vld [vmem:[%s812_s1] sm:$0xff]  ;;  %vm289_vm0 = vcmask 130048   ;;  %v655_v2 = vmov 0.0   ;;  %s269_s11 = scalar_select %p268_p11, %s645_s21, 1  ;;  %v335_v4 = vld [vmem:[%s814_s3 + $0x18] sm:$0xff] }
  0x15   : > { %316 = vmatpush.msra.mxu0 %v293_v0  ;;  %290 = vst.msk [vmem:[#allocation2] sm:$0xff] %vm289_vm0, %v655_v2  ;;  %352 = vmatpush.msra.mxu1 %v335_v4  ;;  %v334_v5 = vld [vmem:[%s814_s3 + $0x10] sm:$0xff]  ;;  %v333_v6 = vld [vmem:[%s814_s3 + $0x8] sm:$0xff]  ;;  %v569_v7 = vld [vmem:[%s813_s2] ss:$0 sm:$0xff]  ;;  %vm336_vm1 = vcmask 261120   ;;  %p593_p13 = pnand %p592_p12, %p726_p4 }
  0x16   : > { %s506_s12 = sshll.u32 %s269_s11, 3  ;;  %v332_v8 = vld [vmem:[%s814_s3] sm:$0xff]  ;;  %s265_s11 = sand.u32 1, %s637_s19  }
  0x17   : > { %317 = vmatpush.msra.mxu0 %v292_v1  ;;  %s271_s15 = scalar_lea.vmem %s811_s0, %s506_s12  ;;  %353 = vmatpush.msra.mxu1 %v334_v5  ;;  %s505_s12 = sshll.u32 %s265_s11, 3  ;;  %v570_v23 = vld [vmem:[%s815_s4] ss:$0 sm:$0xff] }
  0x18   : > { %v291_v3 = vld [vmem:[%s271_s15] sm:$0xff]  ;;  %s267_s25 = scalar_lea.vmem [#allocation3], %s505_s12  ;;  %s373_s21 = scalar_lea.sflag [#allocation4], %s265_s11 }
  0x19   : > { %507 = vmatmul.msk.f32.vlgmr.msra.gmra.mxu0 %vm289_vm0, %v291_v3  ;;  %354 = vmatpush.msra.mxu1 %v333_v6  ;;  %s385_s27 = sshll.u32 %s267_s25, 4  ;;  %p594_p0 = pneg %p593_p13  ;;  %s386_s27 = int_to_ptr.vmem [resolvable:$true] %s385_s27 }
  0x1a   : > { %s595_s12 = scalar_lea.hbm %s816_s5, 16 }
  0x1b   : > { %355 = vmatpush.msra.mxu1 %v332_v8  ;;  %p597_p2 = scmp.lt.s32.totalorder %s595_s12, %s591_s8 }
  0x1c   : > { %v331_v20 = vld [vmem:[#allocation2] sm:$0xff] }
  0x1d   : > { %p598_p3 = por %p597_p2, %p596_p1 }
  0x1f   : > { %p599_p5 = pnand %p598_p3, %p594_p0 }
  0x96   : > { %v319_v9 = vpop.f32.mrf.mxu0 }
  0x97   : > { %v320_v10 = vadd.f32 %v569_v7, %v319_v9 }
  0x99   : > { %v322_v11 = vmin.f32 %v320_v10, 20.0 }
  0x9b   : > { %v323_v12 = vmul.f32 1.442695, %v322_v11 }
  0x9d   : > { %571 = vpow2.f32 %v323_v12 }
  0xa3   : > { %v572_v13 = vpop.eup %571 }
  0xa4   : > { %v325_v14 = vadd.f32 2.0, %v572_v13 }
  0xa6   : > { %v326_v15 = vmul.f32 %v572_v13, %v325_v14 }
  0xa8   : > { %v327_v16 = vadd.f32 2.0, %v326_v15 }
  0xaa   : > { %573 = vrcp.f32 %v327_v16 }
  0xb0   : > { %v574_v17 = vpop.eup %573 }
  0xb1   : > { %v329_v18 = vmul.f32 %v574_v17, %v326_v15 }
  0xb3   : > { %v330_v19 = vmul.f32 %v329_v18, %v320_v10 }
  0xb5   : > { %508 = vmatmul.msk.f32.vlgmr.msra.gmra.mxu1 %vm336_vm1, %v330_v19 }
 0x132   : > { %v357_v21 = vpop.f32.mrf.mxu1 }
 0x133   : > { %v360_v22 = vadd.f32 %v357_v21, %v331_v20 }
 0x135   : > { %361 = vst.msk [vmem:[#allocation2] sm:$0xff] %vm289_vm0, %v360_v22 }
 0x13c   : > { %v365_v24 = vld [vmem:[#allocation2] sm:$0xff] }
 0x13d   : > { %v370_v25 = vadd.f32 %v570_v23, %v365_v24 }
 0x13f   : > { %371 = vst.msk [vmem:[%s267_s25] sm:$0xff] %vm289_vm0, %v370_v25 }
 0x140   : > { %602 = shalt.err (!%p599_p5)
}
 0x141   : > { %513 = dma.vmem_to_hbm [thread:$0]  (%p726_p4), %s386_s27, 128, %s388_s29, %s373_s21  }
 0x142 PF: > { %p519_p6 = scmp.ge.s32.totalorder %s653_s23, 2  ;;  %s399_s11 = sand.u32 1, %s633_s18  }
 0x143   : > { %s400_s15 = scalar_lea.sflag [#allocation4], %s399_s11 }
 0x144   : > { %p516_p7 = pnand %p519_p6, %p733_p8 }
 0x146   : > { %p517_p9 = pneg %p516_p7 }
 0x148   : > { %628 = dma.done.wait (%p517_p9), %s400_s15, 128  }
 0x149   : > { %630 = vsyncadd (%p517_p9), %s400_s15, 4294967168  ;;  %s18_s23 = sadd.s32 1, %s653_s23   ;;  %s819_s18 = smov %s637_s19 }
 0x14a   : > { %p15_p10 = scmp.ge.s32.totalorder %s18_s23, 4   ;;  %s820_s19 = smov %s641_s20 }
 0x14b   : > { %s821_s20 = smov %s739_s6  ;;  %s822_s21 = smov %s649_s22 }
 0x14c   : > { %s823_s22 = smov %s825_s26  ;;  %17 = sbr.rel (!%p15_p10) target bundleno = 4 (0x4), region = 92 }
 0x151   :  { %406 = vsyncpa [#allocation4], 1 }
 0x152   :  { %408 = vsyncpa [#allocation4 + $0x1], 1 }

</bundles_post_ra>
